<compile_context>
chip_gen: v5e
topology: v5e:2x2
jax: 0.10.0
libtpu: 0.0.40
codegen_flags: <defaults>
</compile_context>

<pallas_src>
import functools

import jax
import jax.numpy as jnp
from jax.experimental import pallas as pl
from jax.experimental.pallas import tpu as pltpu


_LANES = 128          # one vreg lane row; fixed.
_MIN_GRID_STEPS = 8   # keep >= 8 pipeline steps so read/write DMA streams
                      # overlap and both v7x TCs get balanced work.


def _round_up(v, m):
    return ((v + m - 1) // m) * m


def _clamp(v, thre):
    """clamp(v, 0, thre) with bounds cast to v.dtype (no accidental promotion)."""
    dt = v.dtype
    lo = jnp.asarray(0, dt)
    hi = jnp.asarray(thre, dt)
    return jnp.minimum(jnp.maximum(v, lo), hi)


def _relux_kernel(x_ref, o_ref, *, thre):
    # Pure VPU work (one max + one min per vreg) -> the kernel is HBM-bound.
    # The ragged last grid block may read stale VMEM rows beyond the valid
    # region; that is safe ONLY because this is a pure elementwise map and
    # Pallas masks the out-of-bounds part of the store.  Do not add cross-row
    # reductions here without revisiting that.
    o_ref[...] = _clamp(x_ref[...], thre).astype(o_ref.dtype)


def _chip_tile_params():
    """(target_block_bytes, vmem_limit_bytes) per TPU generation.

    v5e/v6e have 128 MiB VMEM and slower HBM -> 16 MiB blocks are free.
    v7x has only 64 MiB VMEM per TensorCore and 3.2 TB/s HBM -> 4 MiB blocks
    already sit at ~85%+ of roofline, so size conservatively there (and when
    the hardware query fails / the generation is unknown).
    """
    try:
        info = pltpu.get_tpu_info()
        vmem_cap = getattr(info, "vmem_capacity_bytes", None)
    except Exception:  # defensive: never let the query break the kernel
        vmem_cap = None
    if vmem_cap is not None and vmem_cap >= 100 * 1024 * 1024:
        return 16 * 1024 * 1024, 80 * 1024 * 1024
    return 4 * 1024 * 1024, 32 * 1024 * 1024


def _relux_2d(x2d, thre, donate):
    rows, lanes = x2d.shape
    dtype = x2d.dtype
    itemsize = jnp.dtype(dtype).itemsize

    target_block_bytes, vmem_limit = _chip_tile_params()

    # ---- tile sizing -------------------------------------------------------
    row_bytes = lanes * itemsize
    tr = max(8, (target_block_bytes // row_bytes) // 8 * 8)
    # Cap the block so mid-size tensors still get >= _MIN_GRID_STEPS steps.
    tr = min(tr, max(8, _round_up(pl.cdiv(rows, _MIN_GRID_STEPS), 8)))
    if tr >= rows:
        tr = rows                      # single full block (legal for any rows)
    grid_steps = pl.cdiv(rows, tr)     # ragged last block -> masked store

    cost = pl.CostEstimate(
        flops=2 * rows * lanes,        # one max + one min per element
        transcendentals=0,
        bytes_accessed=2 * rows * lanes * itemsize,
    )

    # NOTE: further v7x-only tweaks (CORE_PARALLEL grid semantics, a third
    # input buffer via pipeline_mode=pl.Buffered(3)) are left out to stay
    # portable across generations; the kernel is already HBM-roofline-bound.
    return pl.pallas_call(
        functools.partial(_relux_kernel, thre=thre),
        out_shape=jax.ShapeDtypeStruct((rows, lanes), dtype),
        grid_spec=pltpu.PrefetchScalarGridSpec(
            num_scalar_prefetch=0,
            grid=(grid_steps,),
            in_specs=[pl.BlockSpec((tr, lanes), lambda i: (i, 0))],
            out_specs=pl.BlockSpec((tr, lanes), lambda i: (i, 0)),
        ),
        compiler_params=pltpu.CompilerParams(
            dimension_semantics=("parallel",),
            vmem_limit_bytes=vmem_limit,
        ),
        cost_estimate=cost,
        input_output_aliases={0: 0} if donate else {},
    )(x2d)


def relux(x, thre=8, donate_input=False):
    """Elementwise clamp(x, 0, thre) (ReLUX forward).

    Works on any shape/dtype.  For best performance call under jax.jit (the
    slab reshape is then pure metadata).  `thre` must stay a Python number;
    it is baked into the kernel, so each distinct value recompiles.  Set
    donate_input=True only when the caller can give up `x`; the output is
    then aliased onto the input buffer (saves one HBM allocation).
    """
    orig_shape = x.shape
    n_elem = x.size
    if n_elem == 0:
        return x

    x_flat = x.reshape(-1)
    main = (n_elem // _LANES) * _LANES
    tail = n_elem - main

    if main == 0:
        # Fewer than one vreg row of data: a kernel launch is not worth it.
        return _clamp(x_flat, thre).reshape(orig_shape)

    # Lane-dense 2-D slab over the lane-aligned prefix.  No pad+slice passes.
    x2d = (x_flat if tail == 0 else x_flat[:main]).reshape(main // _LANES, _LANES)
    out_flat = _relux_2d(x2d, thre, donate_input and tail == 0).reshape(main)

    if tail:
        # Rare: <128 trailing elements handled with plain jnp clamp.
        out_flat = jnp.concatenate([out_flat, _clamp(x_flat[main:], thre)])
    return out_flat.reshape(orig_shape)


if __name__ == "__main__":
    key = jax.random.PRNGKey(0)
    thre = 8

    # NCHW input, values spread so both clamps (at 0 and at thre) fire.
    x = jax.random.normal(key, (2, 4, 16, 16), dtype=jnp.float32) * 10.0

    relux_jit = jax.jit(lambda v: relux(v, thre=thre))
    y = jax.block_until_ready(relux_jit(x))
    assert y.shape == x.shape and y.dtype == x.dtype
    assert jnp.allclose(y, jnp.clip(x, 0.0, float(thre))), "mismatch (main path)"

    # Ragged-rows path: rows not a multiple of the 8-row block -> masked
    # last grid block.
    x2 = jax.random.normal(jax.random.PRNGKey(1), (20, 128), dtype=jnp.float32) * 10.0
    y2 = jax.block_until_ready(relux(x2, thre=thre))
    assert jnp.allclose(y2, jnp.clip(x2, 0.0, float(thre))), "mismatch (ragged rows)"

    # Non-lane-aligned element count: kernel on the aligned prefix + tiny
    # jnp tail (no whole-tensor pad/slice passes).
    x3 = jax.random.normal(jax.random.PRNGKey(2), (2, 3, 43), dtype=jnp.float32) * 10.0
    y3 = jax.block_until_ready(relux(x3, thre=thre))
    assert jnp.allclose(y3, jnp.clip(x3, 0.0, float(thre))), "mismatch (ragged tail)"

    print("KERNEL_OK")
</pallas_src>

<mosaic_0001>
module attributes {stable_mosaic.version = 11 : i64} {
  func.func @_relux_kernel(%arg0: i32, %arg1: memref<8x128xf32, #tpu.memory_space<vmem>>, %arg2: memref<8x128xf32, #tpu.memory_space<vmem>>) attributes {dimension_semantics = [#tpu.dimension_semantics<parallel>], iteration_bounds = array<i64: 2>, scalar_prefetch = 0 : i64, scratch_operands = 0 : i64, tpu.core_type = #tpu.core_type<tc>, window_params = [{transform_indices = @transform_0, window_bounds = array<i64: 8, 128>}, {transform_indices = @transform_1, window_bounds = array<i64: 8, 128>}]} {
    %c0 = arith.constant 0 : index
    %c0_0 = arith.constant 0 : index
    %0 = vector.load %arg1[%c0, %c0_0] : memref<8x128xf32, #tpu.memory_space<vmem>>, vector<8x128xf32>
    %cst = arith.constant 0.000000e+00 : f32
    %1 = vector.broadcast %cst : f32 to vector<8x128xf32>
    %2 = arith.maximumf %0, %1 : vector<8x128xf32>
    %cst_1 = arith.constant 8.000000e+00 : f32
    %3 = vector.broadcast %cst_1 : f32 to vector<8x128xf32>
    %4 = arith.minimumf %2, %3 : vector<8x128xf32>
    %c0_2 = arith.constant 0 : index
    %c0_3 = arith.constant 0 : index
    %5 = vector.load %arg2[%c0_2, %c0_3] : memref<8x128xf32, #tpu.memory_space<vmem>>, vector<8x128xf32>
    tpu.vector_store %arg2[%c0_2, %c0_3], %4 {strides = array<i32>} : memref<8x128xf32, #tpu.memory_space<vmem>>, vector<8x128xf32>,
    return
  }
  func.func @transform_0(%arg0: i32) -> (i32, i32) {
    %c0_i32 = arith.constant 0 : i32
    %c0_i32_0 = arith.constant 0 : i32
    return %arg0, %c0_i32 : i32, i32
  }
  func.func @transform_1(%arg0: i32) -> (i32, i32) {
    %c0_i32 = arith.constant 0 : i32
    %c0_i32_0 = arith.constant 0 : i32
    return %arg0, %c0_i32 : i32, i32
  }
}

</mosaic_0001>

<bundles_post_ra>
// kernel: _lambda_.1
= control target key start
LH: loop header
LB: loop body
LE: loop exit
PB: predicated region body
PF: predicated region fallthrough
CT: control target
= control target key end

     0   :  { %s190_s6 = smov 0   ;;  %s210_s0 = inlined_call_operand.vmem [shape: f32[16,128], index: 0, kind: input, shape index: {}]   ;;  %s211_s1 = inlined_call_operand.vmem [shape: f32[16,128], index: 1, kind: output, shape index: {}]  }
   0x1 LB: > { %s169_s7 = sadd.s32 4294967295, %s192_s6   ;;  %p173_p0 = scmp.ge.s32.totalorder %s192_s6, 1  ;;  %s192_s6 = sphi %s190_s6, %s11_s6  }
   0x2   : > { %p86_p1 = scmp.lt.s32.totalorder %s192_s6, 3 }
   0x4   : > { %p87_p2 = pnand %p173_p0, %p86_p1 }
   0x5   : > { %p104_p3 = scmp.lt.s32.totalorder (!%p87_p2), %s169_s7, 1 }
   0x6   : > { %90 = sbr.rel (%p87_p2) target bundleno = 20 (0x14), region = 24 }
   0xb   : > { %s213_s7 = smov (!%p104_p3, %s169_s7), 1 }
   0xc   : > { %s174_s8 = sshll.u32 %s213_s7, 3 }
   0xd   : > { %s107_s11 = scalar_lea.vmem %s210_s0, %s174_s8  ;;  %s111_s14 = scalar_lea.vmem %s211_s1, %s174_s8 }
   0xe   : > { %v112_v0 = vld [vmem:[%s107_s11] sm:$0xff] }
   0xf   : > { %v113_v1 = vmax.f32 %v112_v0, 0.0 }
  0x11   : > { %v114_v2 = vmin.f32 %v113_v1, 8.0 }
  0x13   : > { %115 = vst [vmem:[%s111_s14] sm:$0xff] %v114_v2 }
  0x14 PF: > { %s11_s6 = sadd.s32 1, %s192_s6  }
  0x15   : > { %p8_p4 = scmp.ge.s32.totalorder %s11_s6, 4  }
  0x17   :  { %10 = sbr.rel (!%p8_p4) target bundleno = 1 (0x1), region = 54 }

</bundles_post_ra>
